<compile_context>
chip_gen: v5e
topology: v5e:2x2
jax: 0.10.0
libtpu: 0.0.40
codegen_flags: <defaults>
</compile_context>

<pallas_src>
import jax
import jax.numpy as jnp
from jax.experimental import pallas as pl
from jax.experimental.pallas import tpu as pltpu

EPS = 1e-5
# Budget for the multi-buffered (xs + out) I/O tiles only; the other half of the
# scoped limit is headroom for in-kernel f32 temporaries / compiler scratch.
_TILE_IO_BUDGET_BYTES = 16 * 1024 * 1024
_VMEM_LIMIT_BYTES = 32 * 1024 * 1024   # safe on v5e/v6e (128 MiB) and v7x (64 MiB physical)


# ----------------------------- kernel helpers ------------------------------

def _row_chunk(tl, d):
    """Rows per inner chunk: keep the f32 chunk accumulator within ~8 vregs."""
    c = max(8, (32 * 1024) // (d * 4))   # CHUNK * D * 4B <= 32 KiB
    c = max(8, (c // 8) * 8)
    return min(tl, c)


def _ln_weighted_chunk(x, w_k, inv_d):
    """x: (rows, D) f32.  Returns w_k * LayerNorm(x) (no affine, eps=EPS)."""
    mean = jnp.sum(x, axis=-1, keepdims=True) * inv_d       # (rows, 1)
    xc = x - mean
    var = jnp.sum(xc * xc, axis=-1, keepdims=True) * inv_d  # centered: >= 0, no cancellation
    scale = w_k * jax.lax.rsqrt(var + EPS)                   # fold scan weight into the scale
    return xc * scale


def _multiscan_list_kernel(w_ref, *refs):
    """w_ref:  SMEM (K,)      softmaxed scan weights (f32).
       refs:   K VMEM (TL, D) input blocks (one per scan direction) + o_ref (TL, D)."""
    *x_refs, o_ref = refs
    tl, d = o_ref.shape
    k_dirs = len(x_refs)
    inv_d = jnp.float32(1.0 / d)
    chunk = _row_chunk(tl, d)
    r = 0
    while r < tl:                                   # static python loop over row chunks
        rows = min(chunk, tl - r)
        acc = None
        for k in range(k_dirs):                     # K innermost: acc stays in vregs
            x = x_refs[k][r:r + rows, :].astype(jnp.float32)
            c = _ln_weighted_chunk(x, w_ref[k], inv_d)
            acc = c if acc is None else acc + c
        o_ref[r:r + rows, :] = acc.astype(o_ref.dtype)
        r += rows


def _multiscan_stacked_kernel(w_ref, xs_ref, o_ref):
    """xs_ref: VMEM (K, TL, D) one (batch, L-tile) block of the stacked layout."""
    k_dirs, tl, d = xs_ref.shape
    inv_d = jnp.float32(1.0 / d)
    chunk = _row_chunk(tl, d)
    r = 0
    while r < tl:
        rows = min(chunk, tl - r)
        acc = None
        for k in range(k_dirs):
            x = xs_ref[k, r:r + rows, :].astype(jnp.float32)
            c = _ln_weighted_chunk(x, w_ref[k], inv_d)
            acc = c if acc is None else acc + c
        o_ref[r:r + rows, :] = acc.astype(o_ref.dtype)
        r += rows


# ----------------------------- tiling / wrappers ----------------------------

def _choose_tile_l(L, K, D, in_bytes, out_bytes, batch, n_buf):
    """Largest L-tile whose multi-buffered I/O tiles fit the budget; prefers exact
    divisors of L (lane-dense, unmasked stores) and >=2 tiles when batch < 2 (v7x)."""
    per_row = n_buf * K * D * in_bytes + 2 * D * out_bytes
    tl_max = max(8, min(L, _TILE_IO_BUDGET_BYTES // max(per_row, 1), 1024))
    if batch < 2 and L >= 16:
        tl_max = min(tl_max, -(-L // 2))            # guarantee >= 2 L-tiles for megacore
    if tl_max >= L:
        return L                                    # full L is always a legal block dim
    for t in range(min(tl_max, L), 7, -1):          # prefer a divisor of L (no ragged tile)
        if t % 8 == 0 and L % t == 0:
            return t
    return max(8, (tl_max // 8) * 8)                # fallback: ragged last tile (masked stores)


def _softmax_weights(scan_weights, K):
    return jax.nn.softmax(scan_weights.astype(jnp.float32).reshape(K), axis=0)


def _compiler_params():
    return pltpu.CompilerParams(
        dimension_semantics=("parallel", "parallel"),
        vmem_limit_bytes=_VMEM_LIMIT_BYTES,
    )


def _multiscan_list(xs_list, scan_weights, input_buffer_count):
    K = len(xs_list)
    B, L, D = xs_list[0].shape
    out_dtype = xs_list[0].dtype
    for x in xs_list:
        assert x.shape == (B, L, D) and x.dtype == out_dtype
    w = _softmax_weights(scan_weights, K)
    itm = jnp.dtype(out_dtype).itemsize
    tl = _choose_tile_l(L, K, D, itm, itm, B, input_buffer_count)
    grid = (pl.cdiv(L, tl), B)                      # L-tile axis first (v7x megacore)

    def idx(l, b):
        return (b, l, 0)

    x_kwargs = {}
    if input_buffer_count != 2:
        x_kwargs["pipeline_mode"] = pl.Buffered(input_buffer_count)   # v5e: try 3

    return pl.pallas_call(
        _multiscan_list_kernel,
        out_shape=jax.ShapeDtypeStruct((B, L, D), out_dtype),
        grid_spec=pltpu.PrefetchScalarGridSpec(
            num_scalar_prefetch=0,
            grid=grid,
            in_specs=[pl.BlockSpec(memory_space=pltpu.SMEM)]
                     + [pl.BlockSpec((None, tl, D), idx, **x_kwargs) for _ in range(K)],
            out_specs=pl.BlockSpec((None, tl, D), idx),
        ),
        compiler_params=_compiler_params(),
    )(w, *xs_list)


def _multiscan_stacked(xs_stacked, scan_weights, input_buffer_count):
    B, K, L, D = xs_stacked.shape
    out_dtype = xs_stacked.dtype
    w = _softmax_weights(scan_weights, K)
    itm = jnp.dtype(out_dtype).itemsize
    tl = _choose_tile_l(L, K, D, itm, itm, B, input_buffer_count)
    grid = (pl.cdiv(L, tl), B)

    x_kwargs = {}
    if input_buffer_count != 2:
        x_kwargs["pipeline_mode"] = pl.Buffered(input_buffer_count)

    return pl.pallas_call(
        _multiscan_stacked_kernel,
        out_shape=jax.ShapeDtypeStruct((B, L, D), out_dtype),
        grid_spec=pltpu.PrefetchScalarGridSpec(
            num_scalar_prefetch=0,
            grid=grid,
            in_specs=[
                pl.BlockSpec(memory_space=pltpu.SMEM),
                pl.BlockSpec((None, K, tl, D), lambda l, b: (b, 0, l, 0), **x_kwargs),
            ],
            out_specs=pl.BlockSpec((None, tl, D), lambda l, b: (b, l, 0)),
        ),
        compiler_params=_compiler_params(),
    )(w, xs_stacked)


def super_multiscan_forward(xs, scan_weights, *, input_buffer_count=2):
    """Super_MultiScan.forward.

    xs:            either a list/tuple of K arrays [B, L, D] (preferred: no HBM
                   stack round-trip) or a pre-stacked [B, K, L, D] array.
    scan_weights:  raw pre-softmax parameter, shape [K] or [K, 1, 1, 1].
    """
    if isinstance(xs, (list, tuple)):
        return _multiscan_list(list(xs), scan_weights, input_buffer_count)
    return _multiscan_stacked(xs, scan_weights, input_buffer_count)


def reference_forward(xs_stacked, scan_weights):
    """Pure-JAX reference (matches the PyTorch module, f32 math)."""
    B, K, L, D = xs_stacked.shape
    w = _softmax_weights(scan_weights, K)
    x = xs_stacked.astype(jnp.float32)
    mean = jnp.mean(x, axis=-1, keepdims=True)
    xc = x - mean
    var = jnp.mean(xc * xc, axis=-1, keepdims=True)
    normed = xc * jax.lax.rsqrt(var + EPS)
    return jnp.sum(normed * w[None, :, None, None], axis=1)


if __name__ == "__main__":
    # Small shapes consistent with the module: 4 scan directions, token_size=(4,4) -> L=16.
    # D chosen as a multiple of 128 so output stores stay lane-dense (unmasked vst).
    K = 4          # ('h', 'h_flip', 'v', 'v_flip')
    B = 2
    H, W = 4, 4
    L = H * W
    D = 128        # super_in_dim

    key = jax.random.PRNGKey(0)
    k_x, k_w = jax.random.split(key)

    # Deterministic synthetic inputs: K already-scanned tensors, each [B, L, D].
    xs_all = jax.random.normal(k_x, (K, B, L, D), dtype=jnp.float32)
    xs_list = [xs_all[k] for k in range(K)]
    # Parameter init mirrors nn.Parameter(0.001 * torch.randn(K, 1, 1, 1)).
    scan_weights = 0.001 * jax.random.normal(k_w, (K, 1, 1, 1), dtype=jnp.float32)

    xs_stacked = jnp.transpose(xs_all, (1, 0, 2, 3))          # [B, K, L, D] (reference/stacked path)
    ref = reference_forward(xs_stacked, scan_weights)

    # Preferred path: K separate inputs, no stack in HBM.
    out_list = jax.block_until_ready(super_multiscan_forward(xs_list, scan_weights))
    assert out_list.shape == (B, L, D)
    assert jnp.allclose(out_list, ref, atol=1e-5, rtol=1e-5)

    # Stacked-layout path (for callers that already hold [B, K, L, D]).
    out_stk = jax.block_until_ready(super_multiscan_forward(xs_stacked, scan_weights))
    assert jnp.allclose(out_stk, ref, atol=1e-5, rtol=1e-5)

    # bf16 inputs halve HBM read traffic on this bandwidth-bound op; kernel upcasts to f32.
    xs_list_bf16 = [x.astype(jnp.bfloat16) for x in xs_list]
    out_bf16 = jax.block_until_ready(super_multiscan_forward(xs_list_bf16, scan_weights))
    ref_bf16 = reference_forward(xs_stacked.astype(jnp.bfloat16), scan_weights)
    assert jnp.allclose(out_bf16.astype(jnp.float32), ref_bf16, atol=5e-2, rtol=5e-2)

    # TODO(synk): scan()/multi_scan()/reverse() permutation helpers and the
    # set_sample_config (sample_in_dim slicing of D) bookkeeping are host-side
    # layout utilities not used by forward(); handle with plain jnp
    # reshape/flip/transpose (and persistent D padding to a multiple of 128 if
    # the sampled embed dim is not lane-aligned) on the caller side.

    print("KERNEL_OK")
</pallas_src>

<mosaic_0001>
module attributes {stable_mosaic.version = 11 : i64} {
  func.func @_multiscan_list_kernel(%arg0: i32, %arg1: i32, %arg2: memref<4xf32, #tpu.memory_space<smem>>, %arg3: memref<1x16x128xf32, #tpu.memory_space<vmem>>, %arg4: memref<1x16x128xf32, #tpu.memory_space<vmem>>, %arg5: memref<1x16x128xf32, #tpu.memory_space<vmem>>, %arg6: memref<1x16x128xf32, #tpu.memory_space<vmem>>, %arg7: memref<1x16x128xf32, #tpu.memory_space<vmem>>) attributes {dimension_semantics = [#tpu.dimension_semantics<parallel>, #tpu.dimension_semantics<parallel>], iteration_bounds = array<i64: 1, 2>, scalar_prefetch = 0 : i64, scratch_operands = 0 : i64, tpu.core_type = #tpu.core_type<tc>, window_params = [{transform_indices = @transform_0, window_bounds = array<i64: 4>}, {transform_indices = @transform_1, window_bounds = array<i64: 1, 16, 128>}, {transform_indices = @transform_2, window_bounds = array<i64: 1, 16, 128>}, {transform_indices = @transform_3, window_bounds = array<i64: 1, 16, 128>}, {transform_indices = @transform_4, window_bounds = array<i64: 1, 16, 128>}, {transform_indices = @transform_5, window_bounds = array<i64: 1, 16, 128>}]} {
    %c0 = arith.constant 0 : index
    %c0_0 = arith.constant 0 : index
    %c0_1 = arith.constant 0 : index
    %0 = vector.load %arg3[%c0, %c0_0, %c0_1] : memref<1x16x128xf32, #tpu.memory_space<vmem>>, vector<1x16x128xf32>
    %1 = vector.shape_cast %0 : vector<1x16x128xf32> to vector<16x128xf32>
    %c0_2 = arith.constant 0 : index
    %2 = memref.load %arg2[%c0_2] : memref<4xf32, #tpu.memory_space<smem>>
    %cst = arith.constant dense<0.000000e+00> : vector<16xf32>
    %3 = vector.multi_reduction <add>, %1, %cst [1] : vector<16x128xf32> to vector<16xf32>
    %4 = vector.shape_cast %3 : vector<16xf32> to vector<16x1xf32>
    %cst_3 = arith.constant 7.812500e-03 : f32
    %5 = vector.broadcast %cst_3 : f32 to vector<16x1xf32>
    %6 = arith.mulf %4, %5 : vector<16x1xf32>
    %7 = vector.broadcast %6 : vector<16x1xf32> to vector<16x128xf32>
    %8 = arith.subf %1, %7 : vector<16x128xf32>
    %9 = arith.mulf %8, %8 : vector<16x128xf32>
    %cst_4 = arith.constant dense<0.000000e+00> : vector<16xf32>
    %10 = vector.multi_reduction <add>, %9, %cst_4 [1] : vector<16x128xf32> to vector<16xf32>
    %11 = vector.shape_cast %10 : vector<16xf32> to vector<16x1xf32>
    %cst_5 = arith.constant 7.812500e-03 : f32
    %12 = vector.broadcast %cst_5 : f32 to vector<16x1xf32>
    %13 = arith.mulf %11, %12 : vector<16x1xf32>
    %cst_6 = arith.constant 9.99999974E-6 : f32
    %14 = vector.broadcast %cst_6 : f32 to vector<16x1xf32>
    %15 = arith.addf %13, %14 : vector<16x1xf32>
    %16 = math.rsqrt %15 : vector<16x1xf32>
    %17 = vector.broadcast %2 : f32 to vector<16x1xf32>
    %18 = arith.mulf %17, %16 : vector<16x1xf32>
    %19 = vector.broadcast %18 : vector<16x1xf32> to vector<16x128xf32>
    %20 = arith.mulf %8, %19 : vector<16x128xf32>
    %c0_7 = arith.constant 0 : index
    %c0_8 = arith.constant 0 : index
    %c0_9 = arith.constant 0 : index
    %21 = vector.load %arg4[%c0_7, %c0_8, %c0_9] : memref<1x16x128xf32, #tpu.memory_space<vmem>>, vector<1x16x128xf32>
    %22 = vector.shape_cast %21 : vector<1x16x128xf32> to vector<16x128xf32>
    %c1 = arith.constant 1 : index
    %23 = memref.load %arg2[%c1] : memref<4xf32, #tpu.memory_space<smem>>
    %cst_10 = arith.constant dense<0.000000e+00> : vector<16xf32>
    %24 = vector.multi_reduction <add>, %22, %cst_10 [1] : vector<16x128xf32> to vector<16xf32>
    %25 = vector.shape_cast %24 : vector<16xf32> to vector<16x1xf32>
    %cst_11 = arith.constant 7.812500e-03 : f32
    %26 = vector.broadcast %cst_11 : f32 to vector<16x1xf32>
    %27 = arith.mulf %25, %26 : vector<16x1xf32>
    %28 = vector.broadcast %27 : vector<16x1xf32> to vector<16x128xf32>
    %29 = arith.subf %22, %28 : vector<16x128xf32>
    %30 = arith.mulf %29, %29 : vector<16x128xf32>
    %cst_12 = arith.constant dense<0.000000e+00> : vector<16xf32>
    %31 = vector.multi_reduction <add>, %30, %cst_12 [1] : vector<16x128xf32> to vector<16xf32>
    %32 = vector.shape_cast %31 : vector<16xf32> to vector<16x1xf32>
    %cst_13 = arith.constant 7.812500e-03 : f32
    %33 = vector.broadcast %cst_13 : f32 to vector<16x1xf32>
    %34 = arith.mulf %32, %33 : vector<16x1xf32>
    %cst_14 = arith.constant 9.99999974E-6 : f32
    %35 = vector.broadcast %cst_14 : f32 to vector<16x1xf32>
    %36 = arith.addf %34, %35 : vector<16x1xf32>
    %37 = math.rsqrt %36 : vector<16x1xf32>
    %38 = vector.broadcast %23 : f32 to vector<16x1xf32>
    %39 = arith.mulf %38, %37 : vector<16x1xf32>
    %40 = vector.broadcast %39 : vector<16x1xf32> to vector<16x128xf32>
    %41 = arith.mulf %29, %40 : vector<16x128xf32>
    %42 = arith.addf %20, %41 : vector<16x128xf32>
    %c0_15 = arith.constant 0 : index
    %c0_16 = arith.constant 0 : index
    %c0_17 = arith.constant 0 : index
    %43 = vector.load %arg5[%c0_15, %c0_16, %c0_17] : memref<1x16x128xf32, #tpu.memory_space<vmem>>, vector<1x16x128xf32>
    %44 = vector.shape_cast %43 : vector<1x16x128xf32> to vector<16x128xf32>
    %c2 = arith.constant 2 : index
    %45 = memref.load %arg2[%c2] : memref<4xf32, #tpu.memory_space<smem>>
    %cst_18 = arith.constant dense<0.000000e+00> : vector<16xf32>
    %46 = vector.multi_reduction <add>, %44, %cst_18 [1] : vector<16x128xf32> to vector<16xf32>
    %47 = vector.shape_cast %46 : vector<16xf32> to vector<16x1xf32>
    %cst_19 = arith.constant 7.812500e-03 : f32
    %48 = vector.broadcast %cst_19 : f32 to vector<16x1xf32>
    %49 = arith.mulf %47, %48 : vector<16x1xf32>
    %50 = vector.broadcast %49 : vector<16x1xf32> to vector<16x128xf32>
    %51 = arith.subf %44, %50 : vector<16x128xf32>
    %52 = arith.mulf %51, %51 : vector<16x128xf32>
    %cst_20 = arith.constant dense<0.000000e+00> : vector<16xf32>
    %53 = vector.multi_reduction <add>, %52, %cst_20 [1] : vector<16x128xf32> to vector<16xf32>
    %54 = vector.shape_cast %53 : vector<16xf32> to vector<16x1xf32>
    %cst_21 = arith.constant 7.812500e-03 : f32
    %55 = vector.broadcast %cst_21 : f32 to vector<16x1xf32>
    %56 = arith.mulf %54, %55 : vector<16x1xf32>
    %cst_22 = arith.constant 9.99999974E-6 : f32
    %57 = vector.broadcast %cst_22 : f32 to vector<16x1xf32>
    %58 = arith.addf %56, %57 : vector<16x1xf32>
    %59 = math.rsqrt %58 : vector<16x1xf32>
    %60 = vector.broadcast %45 : f32 to vector<16x1xf32>
    %61 = arith.mulf %60, %59 : vector<16x1xf32>
    %62 = vector.broadcast %61 : vector<16x1xf32> to vector<16x128xf32>
    %63 = arith.mulf %51, %62 : vector<16x128xf32>
    %64 = arith.addf %42, %63 : vector<16x128xf32>
    %c0_23 = arith.constant 0 : index
    %c0_24 = arith.constant 0 : index
    %c0_25 = arith.constant 0 : index
    %65 = vector.load %arg6[%c0_23, %c0_24, %c0_25] : memref<1x16x128xf32, #tpu.memory_space<vmem>>, vector<1x16x128xf32>
    %66 = vector.shape_cast %65 : vector<1x16x128xf32> to vector<16x128xf32>
    %c3 = arith.constant 3 : index
    %67 = memref.load %arg2[%c3] : memref<4xf32, #tpu.memory_space<smem>>
    %cst_26 = arith.constant dense<0.000000e+00> : vector<16xf32>
    %68 = vector.multi_reduction <add>, %66, %cst_26 [1] : vector<16x128xf32> to vector<16xf32>
    %69 = vector.shape_cast %68 : vector<16xf32> to vector<16x1xf32>
    %cst_27 = arith.constant 7.812500e-03 : f32
    %70 = vector.broadcast %cst_27 : f32 to vector<16x1xf32>
    %71 = arith.mulf %69, %70 : vector<16x1xf32>
    %72 = vector.broadcast %71 : vector<16x1xf32> to vector<16x128xf32>
    %73 = arith.subf %66, %72 : vector<16x128xf32>
    %74 = arith.mulf %73, %73 : vector<16x128xf32>
    %cst_28 = arith.constant dense<0.000000e+00> : vector<16xf32>
    %75 = vector.multi_reduction <add>, %74, %cst_28 [1] : vector<16x128xf32> to vector<16xf32>
    %76 = vector.shape_cast %75 : vector<16xf32> to vector<16x1xf32>
    %cst_29 = arith.constant 7.812500e-03 : f32
    %77 = vector.broadcast %cst_29 : f32 to vector<16x1xf32>
    %78 = arith.mulf %76, %77 : vector<16x1xf32>
    %cst_30 = arith.constant 9.99999974E-6 : f32
    %79 = vector.broadcast %cst_30 : f32 to vector<16x1xf32>
    %80 = arith.addf %78, %79 : vector<16x1xf32>
    %81 = math.rsqrt %80 : vector<16x1xf32>
    %82 = vector.broadcast %67 : f32 to vector<16x1xf32>
    %83 = arith.mulf %82, %81 : vector<16x1xf32>
    %84 = vector.broadcast %83 : vector<16x1xf32> to vector<16x128xf32>
    %85 = arith.mulf %73, %84 : vector<16x128xf32>
    %86 = arith.addf %64, %85 : vector<16x128xf32>
    %c0_31 = arith.constant 0 : index
    %c0_32 = arith.constant 0 : index
    %c0_33 = arith.constant 0 : index
    %87 = vector.load %arg7[%c0_31, %c0_32, %c0_33] : memref<1x16x128xf32, #tpu.memory_space<vmem>>, vector<1x16x128xf32>
    %88 = vector.shape_cast %87 : vector<1x16x128xf32> to vector<16x128xf32>
    %89 = vector.shape_cast %86 : vector<16x128xf32> to vector<1x16x128xf32>
    tpu.vector_store %arg7[%c0_31, %c0_32, %c0_33], %89 {strides = array<i32>} : memref<1x16x128xf32, #tpu.memory_space<vmem>>, vector<1x16x128xf32>,
    return
  }
  func.func @transform_0(%arg0: i32, %arg1: i32) -> i32 {
    %c0_i32 = arith.constant 0 : i32
    %c0_i32_0 = arith.constant 0 : i32
    return %c0_i32 : i32
  }
  func.func @transform_1(%arg0: i32, %arg1: i32) -> (i32, i32, i32) {
    %c0_i32 = arith.constant 0 : i32
    %c0_i32_0 = arith.constant 0 : i32
    return %arg1, %arg0, %c0_i32 : i32, i32, i32
  }
  func.func @transform_2(%arg0: i32, %arg1: i32) -> (i32, i32, i32) {
    %c0_i32 = arith.constant 0 : i32
    %c0_i32_0 = arith.constant 0 : i32
    return %arg1, %arg0, %c0_i32 : i32, i32, i32
  }
  func.func @transform_3(%arg0: i32, %arg1: i32) -> (i32, i32, i32) {
    %c0_i32 = arith.constant 0 : i32
    %c0_i32_0 = arith.constant 0 : i32
    return %arg1, %arg0, %c0_i32 : i32, i32, i32
  }
  func.func @transform_4(%arg0: i32, %arg1: i32) -> (i32, i32, i32) {
    %c0_i32 = arith.constant 0 : i32
    %c0_i32_0 = arith.constant 0 : i32
    return %arg1, %arg0, %c0_i32 : i32, i32, i32
  }
  func.func @transform_5(%arg0: i32, %arg1: i32) -> (i32, i32, i32) {
    %c0_i32 = arith.constant 0 : i32
    %c0_i32_0 = arith.constant 0 : i32
    return %arg1, %arg0, %c0_i32 : i32, i32, i32
  }
}

</mosaic_0001>

<bundles_post_ra>
// kernel: tpu_custom_call.1
= control target key start
LH: loop header
LB: loop body
LE: loop exit
PB: predicated region body
PF: predicated region fallthrough
CT: control target
= control target key end

     0   :  { %s1605_s0 = inlined_call_operand.hbm [shape: f32[4], index: 0, kind: input, shape index: {}]   ;;  %s1606_s1 = inlined_call_operand.hbm [shape: f32[2,16,128], index: 1, kind: input, shape index: {}]   ;;  %s1607_s2 = inlined_call_operand.hbm [shape: f32[2,16,128], index: 2, kind: input, shape index: {}]   ;;  %s1608_s3 = inlined_call_operand.hbm [shape: f32[2,16,128], index: 3, kind: input, shape index: {}]   ;;  %s1609_s4 = inlined_call_operand.hbm [shape: f32[2,16,128], index: 4, kind: input, shape index: {}]   ;;  %s1610_s5 = inlined_call_operand.hbm [shape: f32[2,16,128], index: 5, kind: output, shape index: {}]  }
   0x1   :  { %1620 = sst [smem:[#allocation23_spill]] %s1605_s0 }
   0x2   :  { %1621 = sst [smem:[#allocation24_spill]] %s1606_s1 }
   0x3   :  { %1622 = sst [smem:[#allocation25_spill]] %s1607_s2 }
   0x4   :  { %10 = vsyncpa [#allocation5], 0 }
   0x5   :  { %11 = vsyncpa [#allocation3], 0 }
   0x6   :  { %13 = vsyncpa [#allocation3 + $0x1], 0 }
   0x7   :  { %14 = vsyncpa [#allocation8], 0 }
   0x8   :  { %16 = vsyncpa [#allocation8 + $0x1], 0 }
   0x9   :  { %17 = vsyncpa [#allocation11], 0 }
   0xa   :  { %19 = vsyncpa [#allocation11 + $0x1], 0 }
   0xb   :  { %20 = vsyncpa [#allocation4], 0 }
   0xc   :  { %22 = vsyncpa [#allocation4 + $0x1], 0  ;;  %s1212_s18 = smov 0   ;;  %s1214_s19 = smov 0  }
   0xd   :  { %s1216_s20 = smov 0   ;;  %s1218_s21 = smov 0  }
   0xe   :  { %s1220_s22 = smov 0   ;;  %s1222_s23 = smov 0  }
   0xf LB: > { %1623 = sst [smem:[#allocation18_spill]] %s1163_s20  ;;  %s37_s24 = sadd.s32 1, %s1171_s22  ;;  %s1175_s23 = sphi %s1222_s23, %s28_s23   ;;  %s1171_s22 = sphi %s1220_s22, %s1652_s22   ;;  %s1167_s21 = sphi %s1218_s21, %s1651_s21   ;;  %s1163_s20 = sphi %s1216_s20, %s1650_s20   ;;  %s1159_s19 = sphi %s1214_s19, %s1654_s19   ;;  %s1155_s18 = sphi %s1212_s18, %s1653_s18  }
  0x10   : > { %1624 = sst [smem:[#allocation19_spill]] %s1171_s22  ;;  %s70_s25 = sadd.s32 1, %s1163_s20 }
  0x11   : > { %1625 = sst [smem:[#allocation20_spill]] %s1175_s23  ;;  %p38_p0 = scmp.ge.s32.totalorder %s37_s24, 2 }
  0x12   : > { %p77_p1 = scmp.ne.s32.totalorder %s1163_s20, %s1159_s19  ;;  %p78_p2 = scmp.eq.s32.totalorder %s1175_s23, 0 }
  0x13   : > { %p805_p3 = scmp.ge.s32.totalorder %s1175_s23, 2  ;;  %s1656_s24 = smov (%p38_p0, %s37_s24), 0 }
  0x14   : > { %1626 = sst [smem:[#allocation21_spill]] %s1656_s24  ;;  %p79_p4 = por %p78_p2, %p77_p1 }
  0x15   : > { %p874_p5 = scmp.lt.s32.totalorder %s1175_s23, 2  ;;  %s65_s26 = ssub.s32 %s1171_s22, %s1656_s24 }
  0x16   : > { %s1257_s27 = sand.u32 1, %s1163_s20   ;;  %p68_p6 = scmp.eq.s32.totalorder %s65_s26, 0 }
  0x17   : > { %s1260_s28 = sshll.u32 %s1257_s27, 4  ;;  %s1263_s29 = sshll.u32 %s1171_s22, 4 }
  0x18   : > { %p1265_p7 = pnand %p874_p5, %p79_p4  ;;  %s253_s7 = sand.u32 1, %s1175_s23  }
  0x19   : > { %s1270_s6 = scalar_select %p68_p6, %s1163_s20, %s70_s25  }
  0x1a   : > { %s1629_s2 = sld [smem:[#allocation25_spill]]  ;;  %s257_s11 = scalar_lea.vmem [#allocation7], %s1260_s28 }
  0x1b   : > { %1628 = sst [smem:[#allocation22_spill]] %s1270_s6  ;;  %s267_s12 = sshll.u32 %s257_s11, 4  ;;  %s268_s12 = int_to_ptr.vmem [resolvable:$true] %s267_s12 }
  0x1c   : > { %s1278_s14 = scalar_lea.sflag [#allocation8], %s253_s7  ;;  %s1611_s15 = smov 128  }
  0x1d   : > { %s1613_s16 = smov 8   ;;  %s1287_s17 = sadd.s32 4294967295, %s1175_s23  }
  0x1e   : > { %s802_s25 = sadd.s32 4294967294, %s1175_s23   ;;  %p83_p8 = scmp.ne.s32.totalorder %s1159_s19, %s1155_s18 }
  0x1f   : > { %p84_p9 = scmp.eq.s32.totalorder %s1287_s17, 0  ;;  %p193_p10 = scmp.eq.s32.totalorder %s1287_s17, 1 }
  0x20   : > { %s264_s10 = scalar_lea.hbm %s1629_s2, %s1263_s29  ;;  %p199_p11 = scmp.eq.s32.totalorder %s802_s25, 1 }
  0x21   : > { %s265_s13 = sshll.u32 %s264_s10, 4  ;;  %p803_p12 = scmp.ge.s32.totalorder %s1175_s23, 1  ;;  %s266_s13 = int_to_ptr.hbm [resolvable:$true] %s265_s13 }
  0x22   : > { %862 = dma.hbm_to_vmem [thread:$0]  (!%p1265_p7), %s266_s13, 256, %s268_s12, %s1278_s14, %s1611_s15, %s1611_s15, %s1613_s16  }
  0x23   : > { %p1297_p13 = por %p84_p9, %p83_p8  ;;  %p1304_p0 = por %p193_p10, %p77_p1 }
  0x24   : > { %p1308_p2 = por %p199_p11, %p83_p8  ;;  %p206_p4 = scmp.lt.s32.totalorder %s1175_s23, 3 }
  0x25   : > { %s1633_s0 = sld [smem:[#allocation23_spill]]  ;;  %s233_s16 = scalar_lea.vmem [#allocation6], %s1260_s28 }
  0x26   : > { %p1316_p5 = pnand %p803_p12, %p206_p4  ;;  %s1635_s1 = sld [smem:[#allocation24_spill]] }
  0x27   : > { %s243_s2 = sshll.u32 %s233_s16, 4  ;;  %s1179_s10 = smov [#allocation2]   ;;  %s244_s2 = int_to_ptr.vmem [resolvable:$true] %s243_s2 }
  0x28   : > { %p852_p1 = pneg %p1316_p5  ;;  %s1636_s24 = smov 8  }
  0x29   : > { %s1637_s22 = smov 128   ;;  %s288_s16 = scalar_lea.hbm %s1608_s3, %s1263_s29 }
  0x2a   : > { %p853_p6 = pnand %p852_p1, %p84_p9  ;;  %s312_s20 = scalar_lea.hbm %s1609_s4, %s1263_s29 }
  0x2b   : > { %s218_s11 = sshll.u32 %s1633_s0, 4  ;;  %s230_s0 = scalar_lea.sflag [#allocation3], %s1257_s27  ;;  %s219_s11 = int_to_ptr.hbm [resolvable:$true] %s218_s11 }
  0x2c   : > { %s240_s15 = scalar_lea.hbm %s1635_s1, %s1263_s29  ;;  %s281_s1 = scalar_lea.vmem [#allocation9], %s1260_s28 }
  0x2d   : > { %s241_s9 = sshll.u32 %s240_s15, 4  ;;  %s291_s6 = sshll.u32 %s281_s1, 4  ;;  %s242_s9 = int_to_ptr.hbm [resolvable:$true] %s241_s9  ;;  %s292_s6 = int_to_ptr.vmem [resolvable:$true] %s291_s6 }
  0x2e   : > { %855 = dma.hbm_to_smem (!%p853_p6), %s219_s11, 16, %s1179_s10, [#allocation5]  }
  0x2f   : > { %859 = dma.hbm_to_vmem [thread:$0]  (!%p1265_p7), %s242_s9, 256, %s244_s2, %s230_s0, %s1637_s22, %s1637_s22, %s1636_s24  }
  0x30   : > { %s289_s15 = sshll.u32 %s288_s16, 4  ;;  %s313_s23 = sshll.u32 %s312_s20, 4  ;;  %s290_s15 = int_to_ptr.hbm [resolvable:$true] %s289_s15  ;;  %s314_s23 = int_to_ptr.hbm [resolvable:$true] %s313_s23 }
  0x31   : > { %865 = dma.hbm_to_vmem [thread:$0]  (!%p1265_p7), %s290_s15, 256, %s292_s6, %s1278_s14, %s1637_s22, %s1637_s22, %s1636_s24  }
  0x32   : > { %s305_s0 = scalar_lea.vmem [#allocation10], %s1260_s28  ;;  %s302_s9 = scalar_lea.sflag [#allocation11], %s1257_s27 }
  0x33   : > { %s315_s2 = sshll.u32 %s305_s0, 4  ;;  %327 = sbr.rel (%p1316_p5) target bundleno = 366 (0x16e), region = 40  ;;  %s316_s2 = int_to_ptr.vmem [resolvable:$true] %s315_s2 }
  0x34   : > { %868 = dma.hbm_to_vmem [thread:$0]  (!%p1265_p7), %s314_s23, 256, %s316_s2, %s302_s9, %s1637_s22, %s1637_s22, %s1636_s24  }
  0x38   : > { %1134 = dma.done.wait (%p84_p9), [#allocation5], 16  }
  0x39   : > { %1136 = vsyncadd (%p84_p9), [#allocation5], 4294967280  ;;  %s1364_s1 = sand.u32 1, %s1159_s19  }
  0x3a   : > { %s1367_s20 = sshll.u32 %s1364_s1, 4  ;;  %s335_s27 = scalar_lea.sflag [#allocation3], %s1364_s1 }
  0x3b   : > { %s338_s22 = scalar_lea.vmem [#allocation6], %s1367_s20 }
  0x3c   : > { %1138 = dma.done.wait (%p1297_p13), %s335_s27, 256  }
  0x3d   : > { %1140 = vsyncadd (%p1297_p13), %s335_s27, 4294967040  ;;  %s344_s23 = sand.u32 1, %s1287_s17   ;;  %s348_s28 = scalar_lea.vmem [#allocation7], %s1367_s20 }
  0x3e   : > { %s345_s24 = scalar_lea.sflag [#allocation8], %s344_s23 }
  0x3f   : > { %1142 = dma.done.wait (%p1297_p13), %s345_s24, 512  }
  0x40   : > { %1144 = vsyncadd (%p1297_p13), %s345_s24, 4294966784  ;;  %s358_s29 = scalar_lea.vmem [#allocation9], %s1367_s20  ;;  %s365_s30 = scalar_lea.sflag [#allocation11], %s1364_s1 }
  0x41   : > { %s368_s6 = scalar_lea.vmem [#allocation10], %s1367_s20 }
  0x42   : > { %1146 = dma.done.wait (%p1297_p13), %s365_s30, 256  }
  0x43   : > { %1148 = vsyncadd (%p1297_p13), %s365_s30, 4294967040 }
  0x44   : > { %374 = sfence }
  0x45   : > { %v511_v0 = vld [vmem:[%s358_s29] sm:$0xff]  ;;  %v512_v3 = vld [vmem:[%s358_s29 + $0x8] sm:$0xff]  ;;  %s1463_s14 = sld [smem:[#allocation2 + $0x1]]  ;;  %s837_s13 = sshll.u32 %s1167_s21, 4 }
  0x46   : > { %v463_v1 = vld [vmem:[%s348_s28] sm:$0xff]  ;;  %514 = vadd.xlane.f32.xlu2 %v511_v0  ;;  %v464_v4 = vld [vmem:[%s348_s28 + $0x8] sm:$0xff]  ;;  %s1466_s17 = sld [smem:[#allocation2]]  ;;  %s623_s15 = scalar_lea.hbm %s1610_s5, %s837_s13 }
  0x47   : > { %v417_v2 = vld [vmem:[%s338_s22] sm:$0xff]  ;;  %466 = vadd.xlane.f32.xlu1 %v463_v1  ;;  %v418_v5 = vld [vmem:[%s338_s22 + $0x8] sm:$0xff]  ;;  %s1485_s26 = sld [smem:[#allocation2 + $0x3]]  ;;  %s411_s21 = scalar_lea.vmem [#allocation12], %s1367_s20 }
  0x48   : > { %420 = vadd.xlane.f32.xlu0 %v417_v2  ;;  %v560_v6 = vld [vmem:[%s368_s6 + $0x8] sm:$0xff]  ;;  %v559_v7 = vld [vmem:[%s368_s6] sm:$0xff]  ;;  %s1513_s12 = sld [smem:[#allocation2 + $0x2]]  ;;  %s624_s11 = sshll.u32 %s411_s21, 4  ;;  %s625_s11 = int_to_ptr.vmem [resolvable:$true] %s624_s11 }
  0x49   : > { %s626_s10 = sshll.u32 %s623_s15, 4  ;;  %s610_s0 = scalar_lea.sflag [#allocation4], %s1364_s1  ;;  %s627_s10 = int_to_ptr.hbm [resolvable:$true] %s626_s10 }
  0x4a   : > { %s1095_s2 = sshra.s32 %s627_s10, 4  ;;  %s1101_s22 = scalar_lea.hbm %s1610_s5, 32  ;;  %s1096_s2 = int_to_ptr.hbm [resolvable:$true] %s1095_s2 }
  0x4b   : > { %s1097_s9 = scalar_lea.hbm %s1096_s2, 16  ;;  %p1102_p10 = scmp.lt.s32.totalorder %s1096_s2, %s1610_s5 }
  0x4c   : > { %p1098_p7 = scmp.ne.s32.totalorder %s1096_s2, %s1097_s9  ;;  %p1103_p11 = scmp.lt.s32.totalorder %s1101_s22, %s1097_s9 }
  0x4e   : > { %516 = vadd.xlane.f32.xlu2 %v512_v3  ;;  %p1099_p8 = pnand %p1098_p7, %p1304_p0  ;;  %p1104_p12 = por %p1103_p11, %p1102_p10 }
  0x4f   : > { %468 = vadd.xlane.f32.xlu1 %v464_v4 }
  0x50   : > { %422 = vadd.xlane.f32.xlu0 %v418_v5  ;;  %p1100_p9 = pneg %p1099_p8 }
  0x52   : > { %p1105_p13 = pnand %p1104_p12, %p1100_p9 }
  0x57   : > { %564 = vadd.xlane.f32.xlu1 %v560_v6 }
  0x58   : > { %562 = vadd.xlane.f32.xlu0 %v559_v7 }
  0xb9   : > { %v515_v8 = vpop.xlane.xlu2 %514 }
  0xba   : > { %v467_v9 = vpop.xlane.xlu1 %466  ;;  %v518_v28 = vmul.f32 0.0078125, %v515_v8 }
  0xbb   : > { %v470_v10 = vmul.f32 0.0078125, %v467_v9  ;;  %v421_v11 = vpop.xlane.xlu0 %420 }
  0xbc   : > { %v424_v12 = vmul.f32 0.0078125, %v421_v11  ;;  %v1408_v32 = vsub.f32 %v511_v0, %v518_v28 }
  0xbd   : > { %v1388_v13 = vsub.f32 %v463_v1, %v470_v10 }
  0xbe   : > { %v1390_v14 = vsub.f32 %v417_v2, %v424_v12  ;;  %v522_v36 = vmul.f32 %v1408_v32, %v1408_v32 }
  0xbf   : > { %v474_v15 = vmul.f32 %v1388_v13, %v1388_v13 }
  0xc0   : > { %v428_v16 = vmul.f32 %v1390_v14, %v1390_v14 }
  0xc1   : > { %476 = vadd.xlane.f32.xlu1 %v474_v15  ;;  %v517_v17 = vpop.xlane.xlu2 %516 }
  0xc2   : > { %430 = vadd.xlane.f32.xlu2 %v428_v16  ;;  %v469_v18 = vpop.xlane.xlu1 %468  ;;  %v519_v19 = vmul.f32 0.0078125, %v517_v17 }
  0xc3   : > { %v471_v20 = vmul.f32 0.0078125, %v469_v18  ;;  %v423_v21 = vpop.xlane.xlu0 %422 }
  0xc4   : > { %v425_v22 = vmul.f32 0.0078125, %v423_v21  ;;  %v1396_v23 = vsub.f32 %v512_v3, %v519_v19 }
  0xc5   : > { %v1398_v24 = vsub.f32 %v464_v4, %v471_v20 }
  0xc6   : > { %v1400_v25 = vsub.f32 %v418_v5, %v425_v22  ;;  %v523_v26 = vmul.f32 %v1396_v23, %v1396_v23 }
  0xc7   : > { %v475_v27 = vmul.f32 %v1398_v24, %v1398_v24 }
  0xc8   : > { %v429_v29 = vmul.f32 %v1400_v25, %v1400_v25 }
  0xc9   : > { %526 = vadd.xlane.f32.xlu1 %v523_v26 }
  0xca   : > { %478 = vadd.xlane.f32.xlu2 %v475_v27  ;;  %432 = vadd.xlane.f32.xlu0 %v429_v29  ;;  %v565_v31 = vpop.xlane.xlu1 %564 }
  0xcb   : > { %v563_v30 = vpop.xlane.xlu0 %562  ;;  %v567_v35 = vmul.f32 0.0078125, %v565_v31 }
  0xcc   : > { %v566_v33 = vmul.f32 0.0078125, %v563_v30 }
  0xcd   : > { %v1416_v38 = vsub.f32 %v560_v6, %v567_v35 }
  0xce   : > { %v1410_v34 = vsub.f32 %v559_v7, %v566_v33 }
  0xcf   : > { %v571_v39 = vmul.f32 %v1416_v38, %v1416_v38 }
  0xd0   : > { %v570_v37 = vmul.f32 %v1410_v34, %v1410_v34 }
  0xd2   : > { %524 = vadd.xlane.f32.xlu0 %v522_v36  ;;  %572 = vadd.xlane.f32.xlu2 %v570_v37 }
  0xda   : > { %574 = vadd.xlane.f32.xlu0 %v571_v39 }
 0x134   : > { %v477_v40 = vpop.xlane.xlu1 %476 }
 0x135   : > { %v480_v41 = vmul.f32 0.0078125, %v477_v40  ;;  %v431_v42 = vpop.xlane.xlu2 %430 }
 0x136   : > { %v434_v43 = vmul.f32 0.0078125, %v431_v42  ;;  %v504_v42 = vstv %s1463_s14 }
 0x137   : > { %v1420_v44 = vadd.f32 1e-05, %v480_v41 }
 0x138   : > { %v1422_v45 = vadd.f32 1e-05, %v434_v43  ;;  %v458_v43 = vstv %s1466_s17 }
 0x139   : > { %930 = vrsqrt.f32 %v1420_v44  ;;  %vm490_vm0 = vweird.f32 %v1420_v44 }
 0x13a   : > { %932 = vrsqrt.f32 %v1422_v45  ;;  %vm444_vm2 = vweird.f32 %v1422_v45 }
 0x13c   : > { %v527_v46 = vpop.xlane.xlu1 %526 }
 0x13d   : > { %v529_v47 = vmul.f32 0.0078125, %v527_v46  ;;  %v479_v48 = vpop.xlane.xlu2 %478  ;;  %v433_v49 = vpop.xlane.xlu0 %432 }
 0x13e   : > { %v481_v50 = vmul.f32 0.0078125, %v479_v48  ;;  %v435_v51 = vmul.f32 0.0078125, %v433_v49 }
 0x13f   : > { %v1426_v52 = vpop.eup %930  ;;  %v1428_v53 = vadd.f32 1e-05, %v529_v47 }
 0x140   : > { %v1430_v54 = vpop.eup %932  ;;  %v1432_v55 = vadd.f32 1e-05, %v481_v50  ;;  %v1434_v56 = vadd.f32 1e-05, %v435_v51  ;;  %v485_v57 = vmul.f32 %v1426_v52, %v1420_v44  ;;  %vm491_vm1 = vweird.f32 %v1426_v52 }
 0x141   : > { %934 = vrsqrt.f32 %v1428_v53  ;;  %v439_v58 = vmul.f32 %v1430_v54, %v1422_v45  ;;  %vm445_vm3 = vweird.f32 %v1430_v54  ;;  %vm1488_vm7 = vmor %vm490_vm0, %vm491_vm1  ;;  %vm548_vm11 = vweird.f32 %v1428_v53 }
 0x142   : > { %936 = vrsqrt.f32 %v1432_v55  ;;  %v486_v61 = vmul.f32 %v1426_v52, %v485_v57  ;;  %vm500_vm4 = vweird.f32 %v1432_v55  ;;  %vm1502_vm8 = vmor %vm444_vm2, %vm445_vm3  ;;  %vm454_vm9 = vweird.f32 %v1434_v56 }
 0x143   : > { %938 = vrsqrt.f32 %v1434_v56  ;;  %v440_v62 = vmul.f32 %v1430_v54, %v439_v58 }
 0x144   : > { %v487_v8 = vmul.f32 0.5, %v486_v61 }
 0x145   : > { %v573_v59 = vpop.xlane.xlu2 %572  ;;  %v525_v60 = vpop.xlane.xlu0 %524  ;;  %v441_v9 = vmul.f32 0.5, %v440_v62 }
 0x146   : > { %v576_v63 = vmul.f32 0.0078125, %v573_v59  ;;  %v528_v0 = vmul.f32 0.0078125, %v525_v60  ;;  %v488_v18 = vsub.f32 1.5, %v487_v8 }
 0x147   : > { %v1445_v1 = vpop.eup %934  ;;  %v442_v19 = vsub.f32 1.5, %v441_v9 }
 0x148   : > { %v1447_v2 = vpop.eup %936  ;;  %v1449_v3 = vadd.f32 1e-05, %v576_v63  ;;  %v543_v5 = vmul.f32 %v1445_v1, %v1428_v53  ;;  %v1457_v7 = vadd.f32 1e-05, %v528_v0  ;;  %v489_v30 = vmul.f32 %v1426_v52, %v488_v18 }
 0x149   : > { %v1451_v4 = vpop.eup %938  ;;  %v495_v6 = vmul.f32 %v1447_v2, %v1432_v55  ;;  %v443_v31 = vmul.f32 %v1430_v54, %v442_v19  ;;  %vm501_vm5 = vweird.f32 %v1447_v2  ;;  %vm549_vm12 = vweird.f32 %v1445_v1 }
 0x14a   : > { %v449_v10 = vmul.f32 %v1451_v4, %v1434_v56  ;;  %940 = vrsqrt.f32 %v1449_v3  ;;  %v544_v15 = vmul.f32 %v1445_v1, %v543_v5  ;;  %vm455_vm6 = vweird.f32 %v1451_v4  ;;  %vm1519_vm10 = vmor %vm500_vm4, %vm501_vm5 }
 0x14b   : > { %v496_v11 = vmul.f32 %v1447_v2, %v495_v6  ;;  %942 = vrsqrt.f32 %v1457_v7  ;;  %v493_v47 = vsel %vm1488_vm7, %v1426_v52, %v489_v30  ;;  %v447_v48 = vsel %vm1502_vm8, %v1430_v54, %v443_v31  ;;  %vm1527_vm13 = vmor %vm454_vm9, %vm455_vm6 }
 0x14c   : > { %v450_v12 = vmul.f32 %v1451_v4, %v449_v10  ;;  %v545_v29 = vmul.f32 0.5, %v544_v15  ;;  %vm586_vm14 = vweird.f32 %v1449_v3  ;;  %v505_v57 = vmul.f32 %v504_v42, %v493_v47  ;;  %vm1540_vm0 = vmor %vm548_vm11, %vm549_vm12 }
 0x14d   : > { %v497_v16 = vmul.f32 0.5, %v496_v11  ;;  %v575_v17 = vpop.xlane.xlu0 %574  ;;  %v459_v58 = vmul.f32 %v458_v43, %v447_v48  ;;  %vm538_vm3 = vweird.f32 %v1457_v7  ;;  %v552_v11 = vstv %s1513_s12 }
 0x14e   : > { %v451_v20 = vmul.f32 0.5, %v450_v12  ;;  %v577_v21 = vmul.f32 0.0078125, %v575_v17  ;;  %v546_v46 = vsub.f32 1.5, %v545_v29  ;;  %v507_v9 = vmul.f32 %v505_v57, %v1388_v13 }
 0x14f   : > { %v498_v22 = vsub.f32 1.5, %v497_v16  ;;  %v461_v10 = vmul.f32 %v459_v58, %v1390_v14 }
 0x150   : > { %v452_v26 = vsub.f32 1.5, %v451_v20  ;;  %v1470_v27 = vadd.f32 1e-05, %v577_v21  ;;  %v1472_v28 = vpop.eup %940  ;;  %v547_v59 = vmul.f32 %v1445_v1, %v546_v46 }
 0x151   : > { %v581_v33 = vmul.f32 %v1472_v28, %v1449_v3  ;;  %v943_v35 = vpop.eup %942  ;;  %v499_v37 = vmul.f32 %v1447_v2, %v498_v22  ;;  %vm587_vm15 = vweird.f32 %v1472_v28  ;;  %v509_v13 = vadd.f32 %v507_v9, %v461_v10 }
 0x152   : > { %944 = vrsqrt.f32 %v1470_v27  ;;  %v453_v39 = vmul.f32 %v1451_v4, %v452_v26  ;;  %v533_v41 = vmul.f32 %v943_v35, %v1457_v7  ;;  %vm539_vm1 = vweird.f32 %v943_v35  ;;  %vm588_vm2 = vmor %vm586_vm14, %vm587_vm15 }
 0x153   : > { %v582_v40 = vmul.f32 %v1472_v28, %v581_v33  ;;  %v503_v52 = vsel %vm1519_vm10, %v1447_v2, %v499_v37  ;;  %vm540_vm4 = vmor %vm538_vm3, %vm539_vm1  ;;  %v551_v12 = vsel %vm1540_vm0, %v1445_v1, %v547_v59  ;;  %vm596_vm6 = vweird.f32 %v1470_v27 }
 0x154   : > { %v534_v50 = vmul.f32 %v943_v35, %v533_v41  ;;  %v457_v53 = vsel %vm1527_vm13, %v1451_v4, %v453_v39  ;;  %v506_v0 = vmul.f32 %v504_v42, %v503_v52  ;;  %v600_v4 = vstv %s1485_s26 }
 0x155   : > { %v583_v49 = vmul.f32 0.5, %v582_v40  ;;  %v460_v2 = vmul.f32 %v458_v43, %v457_v53  ;;  %v554_v14 = vmul.f32 %v552_v11, %v551_v12 }
 0x156   : > { %v535_v55 = vmul.f32 0.5, %v534_v50  ;;  %v508_v16 = vmul.f32 %v506_v0, %v1398_v24 }
 0x157   : > { %v584_v54 = vsub.f32 1.5, %v583_v49  ;;  %v462_v17 = vmul.f32 %v460_v2, %v1400_v25  ;;  %v556_v26 = vmul.f32 %v554_v14, %v1396_v23 }
 0x158   : > { %v945_v56 = vpop.eup %944  ;;  %v536_v62 = vsub.f32 1.5, %v535_v55 }
 0x159   : > { %v585_v61 = vmul.f32 %v1472_v28, %v584_v54  ;;  %v591_v63 = vmul.f32 %v945_v56, %v1470_v27  ;;  %vm597_vm5 = vweird.f32 %v945_v56  ;;  %v510_v24 = vadd.f32 %v508_v16, %v462_v17 }
 0x15a   : > { %v537_v6 = vmul.f32 %v943_v35, %v536_v62  ;;  %vm598_vm7 = vmor %vm596_vm6, %vm597_vm5 }
 0x15b   : > { %v589_v5 = vsel %vm588_vm2, %v1472_v28, %v585_v61  ;;  %v592_v8 = vmul.f32 %v945_v56, %v591_v63 }
 0x15c   : > { %v541_v15 = vsel %vm540_vm4, %v943_v35, %v537_v6  ;;  %v601_v18 = vmul.f32 %v600_v4, %v589_v5 }
 0x15d   : > { %v593_v3 = vmul.f32 0.5, %v592_v8  ;;  %v553_v19 = vmul.f32 %v552_v11, %v541_v15 }
 0x15e   : > { %v603_v25 = vmul.f32 %v601_v18, %v1410_v34 }
 0x15f   : > { %v594_v7 = vsub.f32 1.5, %v593_v3  ;;  %v555_v20 = vmul.f32 %v553_v19, %v1408_v32  ;;  %v558_v32 = vadd.f32 %v556_v26, %v510_v24 }
 0x161   : > { %v595_v21 = vmul.f32 %v945_v56, %v594_v7  ;;  %v557_v1 = vadd.f32 %v555_v20, %v509_v13 }
 0x163   : > { %v599_v22 = vsel %vm598_vm7, %v945_v56, %v595_v21  ;;  %v605_v29 = vadd.f32 %v603_v25, %v557_v1 }
 0x164   : > { %v602_v28 = vmul.f32 %v600_v4, %v599_v22 }
 0x165   : > { %607 = vst [vmem:[%s411_s21] sm:$0xff] %v605_v29 }
 0x166   : > { %v604_v27 = vmul.f32 %v602_v28, %v1416_v38 }
 0x168   : > { %v606_v30 = vadd.f32 %v604_v27, %v558_v32 }
 0x16a   : > { %608 = vst [vmem:[%s411_s21 + $0x8] sm:$0xff] %v606_v30 }
 0x16b   : > { %1108 = shalt.err (!%p1105_p13)
}
 0x16c   : > { %s1180_s1 = smov 128   ;;  %s1181_s28 = smov 8  }
 0x16d   : > { %850 = dma.vmem_to_hbm [thread:$0]  (%p1304_p0), %s625_s11, 256, %s627_s10, %s610_s0, %s1180_s1, %s1180_s1, %s1181_s28  }
 0x16e PF: > { %s1648_s29 = sld [smem:[#allocation20_spill]]  ;;  %s641_s30 = sand.u32 1, %s1155_s18  }
 0x16f   : > { %p870_p4 = pnand %p805_p3, %p1308_p2  ;;  %s642_s6 = scalar_lea.sflag [#allocation4], %s641_s30 }
 0x171   : > { %p871_p5 = pneg %p870_p4 }
 0x173   : > { %1150 = dma.done.wait (%p871_p5), %s642_s6, 256  }
 0x174   : > { %1152 = vsyncadd (%p871_p5), %s642_s6, 4294967040  ;;  %s28_s23 = sadd.s32 1, %s1648_s29   ;;  %s1649_s14 = sld [smem:[#allocation18_spill]] }
 0x175   : > { %p25_p1 = scmp.ge.s32.totalorder %s28_s23, 4   ;;  %s1650_s20 = sld [smem:[#allocation22_spill]] }
 0x176   : > { %s1651_s21 = sld [smem:[#allocation19_spill]]  ;;  %s1653_s18 = smov %s1159_s19 }
 0x177   : > { %s1652_s22 = sld [smem:[#allocation21_spill]]  ;;  %27 = sbr.rel (!%p25_p1) target bundleno = 15 (0xf), region = 127 }
 0x17a   : > { %s1654_s19 = smov %s1649_s14 }
 0x17c   :  { %648 = vsyncpa [#allocation3], 1 }
 0x17d   :  { %650 = vsyncpa [#allocation3 + $0x1], 1 }
 0x17e   :  { %651 = vsyncpa [#allocation8], 1 }
 0x17f   :  { %653 = vsyncpa [#allocation8 + $0x1], 1 }
 0x180   :  { %654 = vsyncpa [#allocation11], 1 }
 0x181   :  { %656 = vsyncpa [#allocation11 + $0x1], 1 }
 0x182   :  { %657 = vsyncpa [#allocation4], 1 }
 0x183   :  { %659 = vsyncpa [#allocation4 + $0x1], 1 }
 0x184   :  { %660 = vsyncpa [#allocation5], 1 }
 0x185   :  { %662 = vsyncpa [#allocation5 + $0x1], 1 }

</bundles_post_ra>
